<compile_context>
chip_gen: v7x
topology: tpu7x:2x2x1
jax: 0.10.0
libtpu: 0.0.40
codegen_flags: <defaults>
</compile_context>

<pallas_src>
import functools

import jax
import jax.numpy as jnp
from jax.experimental import pallas as pl
from jax.experimental.pallas import tpu as pltpu


def _downsample_kernel(x_ref, w_ref, b_ref, o_ref, *, d_head, ds, pack):
    # x_ref : [TILE_R, pack*ds*D]   pack positions x ds slots x D channels / row
    # w_ref : [ds, D]               softmax(w).T * conv_scale
    # b_ref : [1, D]                conv bias
    # o_ref : [TILE_R, pack*D]
    D = d_head
    # hoist the small broadcasts out of the unrolled loops
    w_rows = [w_ref[s].astype(jnp.float32)[None, :] for s in range(ds)]
    bias_row = b_ref[0].astype(jnp.float32)[None, :]
    for p in range(pack):
        acc = bias_row
        for s in range(ds):
            off = (p * ds + s) * D
            # fused per-chunk multiply-accumulate; f32 upcast per chunk only
            acc = acc + x_ref[:, off:off + D].astype(jnp.float32) * w_rows[s]
        o_ref[:, p * D:(p + 1) * D] = acc.astype(o_ref.dtype)


def downsample_pallas(x, w, conv_weight, conv_bias, ds=2):
    """x: [B, H, L, D]; w: [D, ds]; conv_weight/bias: [D]. Returns [B, H, ceil(L/ds), D]."""
    B, H, L, D = x.shape
    N = B * H
    L_ds = (L + ds - 1) // ds
    L_pad = L_ds * ds
    f32 = jnp.float32
    itemsize = x.dtype.itemsize

    x_flat = x.reshape(N, L, D)
    if L_pad != L:
        # ragged L pays one small HBM pad copy so the channel-flatten below
        # stays a free reshape; L % ds == 0 pays nothing.
        x_flat = jnp.pad(x_flat, ((0, 0), (0, L_pad - L), (0, 0)))

    # Pack P downsampled positions per row so the output last dim is a
    # multiple of 128 lanes (dense vst + dense output DMA).
    pack = 1
    for cand in (8, 4, 2):
        if (N * L_ds) % cand == 0 and (cand * D) % 128 == 0:
            pack = cand
            break
    # TODO(synk): if no candidate divides N*L_ds (or D has an odd lane width)
    # we fall back to pack=1, which is correct but stores lane-sparse blocks.

    W_in = pack * ds * D
    W_out = pack * D
    R_super = (N * L_ds) // pack
    x_g = x_flat.reshape(R_super, W_in)                       # free reshape

    sw_t = jax.nn.softmax(w.astype(f32), axis=1).T            # [ds, D] (hoisted softmax)
    w_eff = sw_t * conv_weight.astype(f32)[None, :]           # [ds, D] folded conv scale
    b_eff = conv_bias.astype(f32).reshape(1, D)               # [1, D]

    # ---- per-generation VMEM / tile sizing --------------------------------
    phys_vmem = 128 * 1024 * 1024
    try:
        phys_vmem = int(pltpu.get_tpu_info().vmem_capacity_bytes)
    except Exception:
        pass
    # explicit scoped-VMEM limit: ~65% of physical, capped at 64 MiB
    # (v5e/v6e: 64 MiB of 128 MiB physical; v7x: ~42 MiB of 64 MiB).
    vmem_limit = min(int(phys_vmem * 0.65), 64 * 1024 * 1024)
    # input-block target: double-buffered in + out (~ 3x input for ds=2) plus
    # per-chunk f32 temps must sit well under vmem_limit -> ~1/5 of it.
    in_bytes_target = max(vmem_limit // 5, 512 * 1024)

    row_bytes = W_in * itemsize
    tile_r = max(8, in_bytes_target // row_bytes)
    if R_super > 8:
        # keep >=2 row blocks when feasible so both v7x TensorCores get work;
        # on single-TC v5e/v6e this costs at most one extra ~0.35us grid step.
        half = (((R_super + 1) // 2) + 7) // 8 * 8
        tile_r = min(tile_r, half)
    if tile_r >= R_super:
        tile_r = R_super                       # full-extent block (always legal)
    else:
        tile_r = max(8, (tile_r // 8) * 8)     # sublane-aligned tile

    grid = (pl.cdiv(R_super, tile_r),)

    kernel = functools.partial(_downsample_kernel, d_head=D, ds=ds, pack=pack)

    cost = pl.CostEstimate(
        flops=2 * N * L_pad * D,
        transcendentals=0,
        bytes_accessed=(N * L_pad * D + N * L_ds * D) * itemsize,
    )

    out = pl.pallas_call(
        kernel,
        out_shape=jax.ShapeDtypeStruct((R_super, W_out), x.dtype),
        grid_spec=pltpu.PrefetchScalarGridSpec(
            num_scalar_prefetch=0,
            grid=grid,
            in_specs=[
                pl.BlockSpec((tile_r, W_in), lambda i: (i, 0)),
                pl.BlockSpec((ds, D), lambda i: (0, 0)),
                pl.BlockSpec((1, D), lambda i: (0, 0)),
            ],
            out_specs=pl.BlockSpec((tile_r, W_out), lambda i: (i, 0)),
        ),
        compiler_params=pltpu.CompilerParams(
            dimension_semantics=("parallel",),
            vmem_limit_bytes=vmem_limit,
        ),
        cost_estimate=cost,
    )(x_g, w_eff, b_eff)

    out = out.reshape(N, L_ds, D)
    rem = L % ds
    if rem != 0:
        # The tail group only holds `rem` real slots; the kernel applied the
        # full-group bias, so correct it with one tiny [N, D] update here
        # (keeps the kernel body identical for every block).
        delta = conv_bias.astype(f32) * (jnp.sum(sw_t[:rem], axis=0) - 1.0)
        out = out.at[:, L // ds, :].add(delta.astype(out.dtype))
    return out.reshape(B, H, L_ds, D)


def downsample_reference(x, w, conv_weight, conv_bias, ds=2):
    """Pure-JAX replica of the PyTorch forward, for verification."""
    B, H, L, D = x.shape
    L_ds = (L + ds - 1) // ds
    y = x * conv_weight.reshape(1, 1, 1, D) + conv_bias.reshape(1, 1, 1, D)
    y = jnp.pad(y, ((0, 0), (0, 0), (0, L_ds * ds - L), (0, 0)))
    y = y.reshape(B, H, L_ds, ds, D)               # [b, h, l, s, d]
    sw = jax.nn.softmax(w, axis=1)                 # [D, ds]
    return jnp.einsum("bhlsd,ds->bhld", y, sw)


if __name__ == "__main__":
    d_head = 64
    ds_factor = 2

    key = jax.random.PRNGKey(0)
    kw, kb, kx1, kx2, kx3 = jax.random.split(key, 5)

    # Deterministic parameter init (mirrors shapes from the module __init__):
    #   self.w  : [d_head, ds], constant 0.5
    #   self.ff : depthwise Conv1d(d_head, d_head, 1) -> weight [d_head], bias [d_head]
    w_param = jnp.full((d_head, ds_factor), 0.5, dtype=jnp.float32)
    conv_weight = jax.random.normal(kw, (d_head,), dtype=jnp.float32) * 0.1
    conv_bias = jax.random.normal(kb, (d_head,), dtype=jnp.float32) * 0.1

    def check(x):
        L = x.shape[2]
        out = jax.block_until_ready(
            downsample_pallas(x, w_param, conv_weight, conv_bias, ds=ds_factor))
        ref = downsample_reference(x, w_param, conv_weight, conv_bias, ds=ds_factor)
        L_ds = (L + ds_factor - 1) // ds_factor
        assert out.shape == x.shape[:2] + (L_ds, d_head), out.shape
        assert out.shape == ref.shape, (out.shape, ref.shape)
        err = float(jnp.max(jnp.abs(out - ref)))
        assert jnp.allclose(out, ref, atol=1e-5, rtol=1e-5), err

    # Case 1: even sequence length (no padding, no tail fix)
    check(jax.random.normal(kx1, (2, 4, 16, d_head), dtype=jnp.float32))

    # Case 2: ragged sequence length (tail-group bias correction)
    check(jax.random.normal(kx2, (2, 2, 15, d_head), dtype=jnp.float32))

    # Case 3: ragged + multiple row blocks + partial last block
    check(jax.random.normal(kx3, (2, 4, 249, d_head), dtype=jnp.float32))

    print("KERNEL_OK")
</pallas_src>

<mosaic_0001>
module attributes {stable_mosaic.version = 11 : i64} {
  func.func @_downsample_kernel(%arg0: i32, %arg1: memref<8x1024xf32, #tpu.memory_space<vmem>>, %arg2: memref<2x64xf32, #tpu.memory_space<vmem>>, %arg3: memref<1x64xf32, #tpu.memory_space<vmem>>, %arg4: memref<8x512xf32, #tpu.memory_space<vmem>>) attributes {dimension_semantics = [#tpu.dimension_semantics<parallel>], iteration_bounds = array<i64: 1>, scalar_prefetch = 0 : i64, scratch_operands = 0 : i64, tpu.core_type = #tpu.core_type<tc>, window_params = [{transform_indices = @transform_0, window_bounds = array<i64: 8, 1024>}, {pipeline_mode = #tpu.pipeline_mode<synchronous>, transform_indices = @transform_1, window_bounds = array<i64: 2, 64>}, {pipeline_mode = #tpu.pipeline_mode<synchronous>, transform_indices = @transform_2, window_bounds = array<i64: 1, 64>}, {transform_indices = @transform_3, window_bounds = array<i64: 8, 512>}]} {
    %c0 = arith.constant 0 : index
    %c0_0 = arith.constant 0 : index
    %0 = vector.load %arg2[%c0, %c0_0] : memref<2x64xf32, #tpu.memory_space<vmem>>, vector<1x64xf32>
    %1 = vector.shape_cast %0 : vector<1x64xf32> to vector<64xf32>
    %2 = vector.shape_cast %1 : vector<64xf32> to vector<1x64xf32>
    %c1 = arith.constant 1 : index
    %c0_1 = arith.constant 0 : index
    %3 = vector.load %arg2[%c1, %c0_1] : memref<2x64xf32, #tpu.memory_space<vmem>>, vector<1x64xf32>
    %4 = vector.shape_cast %3 : vector<1x64xf32> to vector<64xf32>
    %5 = vector.shape_cast %4 : vector<64xf32> to vector<1x64xf32>
    %c0_2 = arith.constant 0 : index
    %c0_3 = arith.constant 0 : index
    %6 = vector.load %arg3[%c0_2, %c0_3] : memref<1x64xf32, #tpu.memory_space<vmem>>, vector<1x64xf32>
    %7 = vector.shape_cast %6 : vector<1x64xf32> to vector<64xf32>
    %8 = vector.shape_cast %7 : vector<64xf32> to vector<1x64xf32>
    %c0_4 = arith.constant 0 : index
    %c0_5 = arith.constant 0 : index
    %9 = vector.load %arg1[%c0_4, %c0_5] : memref<8x1024xf32, #tpu.memory_space<vmem>>, vector<8x64xf32>
    %10 = vector.broadcast %2 : vector<1x64xf32> to vector<8x64xf32>
    %11 = arith.mulf %9, %10 : vector<8x64xf32>
    %12 = vector.broadcast %8 : vector<1x64xf32> to vector<8x64xf32>
    %13 = arith.addf %12, %11 : vector<8x64xf32>
    %c0_6 = arith.constant 0 : index
    %c64 = arith.constant 64 : index
    %14 = vector.load %arg1[%c0_6, %c64] : memref<8x1024xf32, #tpu.memory_space<vmem>>, vector<8x64xf32>
    %15 = vector.broadcast %5 : vector<1x64xf32> to vector<8x64xf32>
    %16 = arith.mulf %14, %15 : vector<8x64xf32>
    %17 = arith.addf %13, %16 : vector<8x64xf32>
    %c0_7 = arith.constant 0 : index
    %c0_8 = arith.constant 0 : index
    %18 = vector.load %arg4[%c0_7, %c0_8] : memref<8x512xf32, #tpu.memory_space<vmem>>, vector<8x64xf32>
    tpu.vector_store %arg4[%c0_7, %c0_8], %17 {strides = array<i32>} : memref<8x512xf32, #tpu.memory_space<vmem>>, vector<8x64xf32>,
    %c0_9 = arith.constant 0 : index
    %c128 = arith.constant 128 : index
    %19 = vector.load %arg1[%c0_9, %c128] : memref<8x1024xf32, #tpu.memory_space<vmem>>, vector<8x64xf32>
    %20 = vector.broadcast %2 : vector<1x64xf32> to vector<8x64xf32>
    %21 = arith.mulf %19, %20 : vector<8x64xf32>
    %22 = vector.broadcast %8 : vector<1x64xf32> to vector<8x64xf32>
    %23 = arith.addf %22, %21 : vector<8x64xf32>
    %c0_10 = arith.constant 0 : index
    %c192 = arith.constant 192 : index
    %24 = vector.load %arg1[%c0_10, %c192] : memref<8x1024xf32, #tpu.memory_space<vmem>>, vector<8x64xf32>
    %25 = vector.broadcast %5 : vector<1x64xf32> to vector<8x64xf32>
    %26 = arith.mulf %24, %25 : vector<8x64xf32>
    %27 = arith.addf %23, %26 : vector<8x64xf32>
    %c0_11 = arith.constant 0 : index
    %c64_12 = arith.constant 64 : index
    %28 = vector.load %arg4[%c0_11, %c64_12] : memref<8x512xf32, #tpu.memory_space<vmem>>, vector<8x64xf32>
    tpu.vector_store %arg4[%c0_11, %c64_12], %27 {strides = array<i32>} : memref<8x512xf32, #tpu.memory_space<vmem>>, vector<8x64xf32>,
    %c0_13 = arith.constant 0 : index
    %c256 = arith.constant 256 : index
    %29 = vector.load %arg1[%c0_13, %c256] : memref<8x1024xf32, #tpu.memory_space<vmem>>, vector<8x64xf32>
    %30 = vector.broadcast %2 : vector<1x64xf32> to vector<8x64xf32>
    %31 = arith.mulf %29, %30 : vector<8x64xf32>
    %32 = vector.broadcast %8 : vector<1x64xf32> to vector<8x64xf32>
    %33 = arith.addf %32, %31 : vector<8x64xf32>
    %c0_14 = arith.constant 0 : index
    %c320 = arith.constant 320 : index
    %34 = vector.load %arg1[%c0_14, %c320] : memref<8x1024xf32, #tpu.memory_space<vmem>>, vector<8x64xf32>
    %35 = vector.broadcast %5 : vector<1x64xf32> to vector<8x64xf32>
    %36 = arith.mulf %34, %35 : vector<8x64xf32>
    %37 = arith.addf %33, %36 : vector<8x64xf32>
    %c0_15 = arith.constant 0 : index
    %c128_16 = arith.constant 128 : index
    %38 = vector.load %arg4[%c0_15, %c128_16] : memref<8x512xf32, #tpu.memory_space<vmem>>, vector<8x64xf32>
    tpu.vector_store %arg4[%c0_15, %c128_16], %37 {strides = array<i32>} : memref<8x512xf32, #tpu.memory_space<vmem>>, vector<8x64xf32>,
    %c0_17 = arith.constant 0 : index
    %c384 = arith.constant 384 : index
    %39 = vector.load %arg1[%c0_17, %c384] : memref<8x1024xf32, #tpu.memory_space<vmem>>, vector<8x64xf32>
    %40 = vector.broadcast %2 : vector<1x64xf32> to vector<8x64xf32>
    %41 = arith.mulf %39, %40 : vector<8x64xf32>
    %42 = vector.broadcast %8 : vector<1x64xf32> to vector<8x64xf32>
    %43 = arith.addf %42, %41 : vector<8x64xf32>
    %c0_18 = arith.constant 0 : index
    %c448 = arith.constant 448 : index
    %44 = vector.load %arg1[%c0_18, %c448] : memref<8x1024xf32, #tpu.memory_space<vmem>>, vector<8x64xf32>
    %45 = vector.broadcast %5 : vector<1x64xf32> to vector<8x64xf32>
    %46 = arith.mulf %44, %45 : vector<8x64xf32>
    %47 = arith.addf %43, %46 : vector<8x64xf32>
    %c0_19 = arith.constant 0 : index
    %c192_20 = arith.constant 192 : index
    %48 = vector.load %arg4[%c0_19, %c192_20] : memref<8x512xf32, #tpu.memory_space<vmem>>, vector<8x64xf32>
    tpu.vector_store %arg4[%c0_19, %c192_20], %47 {strides = array<i32>} : memref<8x512xf32, #tpu.memory_space<vmem>>, vector<8x64xf32>,
    %c0_21 = arith.constant 0 : index
    %c512 = arith.constant 512 : index
    %49 = vector.load %arg1[%c0_21, %c512] : memref<8x1024xf32, #tpu.memory_space<vmem>>, vector<8x64xf32>
    %50 = vector.broadcast %2 : vector<1x64xf32> to vector<8x64xf32>
    %51 = arith.mulf %49, %50 : vector<8x64xf32>
    %52 = vector.broadcast %8 : vector<1x64xf32> to vector<8x64xf32>
    %53 = arith.addf %52, %51 : vector<8x64xf32>
    %c0_22 = arith.constant 0 : index
    %c576 = arith.constant 576 : index
    %54 = vector.load %arg1[%c0_22, %c576] : memref<8x1024xf32, #tpu.memory_space<vmem>>, vector<8x64xf32>
    %55 = vector.broadcast %5 : vector<1x64xf32> to vector<8x64xf32>
    %56 = arith.mulf %54, %55 : vector<8x64xf32>
    %57 = arith.addf %53, %56 : vector<8x64xf32>
    %c0_23 = arith.constant 0 : index
    %c256_24 = arith.constant 256 : index
    %58 = vector.load %arg4[%c0_23, %c256_24] : memref<8x512xf32, #tpu.memory_space<vmem>>, vector<8x64xf32>
    tpu.vector_store %arg4[%c0_23, %c256_24], %57 {strides = array<i32>} : memref<8x512xf32, #tpu.memory_space<vmem>>, vector<8x64xf32>,
    %c0_25 = arith.constant 0 : index
    %c640 = arith.constant 640 : index
    %59 = vector.load %arg1[%c0_25, %c640] : memref<8x1024xf32, #tpu.memory_space<vmem>>, vector<8x64xf32>
    %60 = vector.broadcast %2 : vector<1x64xf32> to vector<8x64xf32>
    %61 = arith.mulf %59, %60 : vector<8x64xf32>
    %62 = vector.broadcast %8 : vector<1x64xf32> to vector<8x64xf32>
    %63 = arith.addf %62, %61 : vector<8x64xf32>
    %c0_26 = arith.constant 0 : index
    %c704 = arith.constant 704 : index
    %64 = vector.load %arg1[%c0_26, %c704] : memref<8x1024xf32, #tpu.memory_space<vmem>>, vector<8x64xf32>
    %65 = vector.broadcast %5 : vector<1x64xf32> to vector<8x64xf32>
    %66 = arith.mulf %64, %65 : vector<8x64xf32>
    %67 = arith.addf %63, %66 : vector<8x64xf32>
    %c0_27 = arith.constant 0 : index
    %c320_28 = arith.constant 320 : index
    %68 = vector.load %arg4[%c0_27, %c320_28] : memref<8x512xf32, #tpu.memory_space<vmem>>, vector<8x64xf32>
    tpu.vector_store %arg4[%c0_27, %c320_28], %67 {strides = array<i32>} : memref<8x512xf32, #tpu.memory_space<vmem>>, vector<8x64xf32>,
    %c0_29 = arith.constant 0 : index
    %c768 = arith.constant 768 : index
    %69 = vector.load %arg1[%c0_29, %c768] : memref<8x1024xf32, #tpu.memory_space<vmem>>, vector<8x64xf32>
    %70 = vector.broadcast %2 : vector<1x64xf32> to vector<8x64xf32>
    %71 = arith.mulf %69, %70 : vector<8x64xf32>
    %72 = vector.broadcast %8 : vector<1x64xf32> to vector<8x64xf32>
    %73 = arith.addf %72, %71 : vector<8x64xf32>
    %c0_30 = arith.constant 0 : index
    %c832 = arith.constant 832 : index
    %74 = vector.load %arg1[%c0_30, %c832] : memref<8x1024xf32, #tpu.memory_space<vmem>>, vector<8x64xf32>
    %75 = vector.broadcast %5 : vector<1x64xf32> to vector<8x64xf32>
    %76 = arith.mulf %74, %75 : vector<8x64xf32>
    %77 = arith.addf %73, %76 : vector<8x64xf32>
    %c0_31 = arith.constant 0 : index
    %c384_32 = arith.constant 384 : index
    %78 = vector.load %arg4[%c0_31, %c384_32] : memref<8x512xf32, #tpu.memory_space<vmem>>, vector<8x64xf32>
    tpu.vector_store %arg4[%c0_31, %c384_32], %77 {strides = array<i32>} : memref<8x512xf32, #tpu.memory_space<vmem>>, vector<8x64xf32>,
    %c0_33 = arith.constant 0 : index
    %c896 = arith.constant 896 : index
    %79 = vector.load %arg1[%c0_33, %c896] : memref<8x1024xf32, #tpu.memory_space<vmem>>, vector<8x64xf32>
    %80 = vector.broadcast %2 : vector<1x64xf32> to vector<8x64xf32>
    %81 = arith.mulf %79, %80 : vector<8x64xf32>
    %82 = vector.broadcast %8 : vector<1x64xf32> to vector<8x64xf32>
    %83 = arith.addf %82, %81 : vector<8x64xf32>
    %c0_34 = arith.constant 0 : index
    %c960 = arith.constant 960 : index
    %84 = vector.load %arg1[%c0_34, %c960] : memref<8x1024xf32, #tpu.memory_space<vmem>>, vector<8x64xf32>
    %85 = vector.broadcast %5 : vector<1x64xf32> to vector<8x64xf32>
    %86 = arith.mulf %84, %85 : vector<8x64xf32>
    %87 = arith.addf %83, %86 : vector<8x64xf32>
    %c0_35 = arith.constant 0 : index
    %c448_36 = arith.constant 448 : index
    %88 = vector.load %arg4[%c0_35, %c448_36] : memref<8x512xf32, #tpu.memory_space<vmem>>, vector<8x64xf32>
    tpu.vector_store %arg4[%c0_35, %c448_36], %87 {strides = array<i32>} : memref<8x512xf32, #tpu.memory_space<vmem>>, vector<8x64xf32>,
    return
  }
  func.func @transform_0(%arg0: i32) -> (i32, i32) {
    %c0_i32 = arith.constant 0 : i32
    %c0_i32_0 = arith.constant 0 : i32
    return %arg0, %c0_i32 : i32, i32
  }
  func.func @transform_1(%arg0: i32) -> (i32, i32) {
    %c0_i32 = arith.constant 0 : i32
    %c0_i32_0 = arith.constant 0 : i32
    %c0_i32_1 = arith.constant 0 : i32
    return %c0_i32, %c0_i32_0 : i32, i32
  }
  func.func @transform_2(%arg0: i32) -> (i32, i32) {
    %c0_i32 = arith.constant 0 : i32
    %c0_i32_0 = arith.constant 0 : i32
    %c0_i32_1 = arith.constant 0 : i32
    return %c0_i32, %c0_i32_0 : i32, i32
  }
  func.func @transform_3(%arg0: i32) -> (i32, i32) {
    %c0_i32 = arith.constant 0 : i32
    %c0_i32_0 = arith.constant 0 : i32
    return %arg0, %c0_i32 : i32, i32
  }
}

</mosaic_0001>

<bundles_post_ra>
// kernel: tpu_custom_call.1
= control target key start
LH: loop header
LB: loop body
LE: loop exit
PB: predicated region body
PF: predicated region fallthrough
CT: control target
= control target key end

     0   :  { %8 = vsyncpa [#allocation3], 0  ;;  %s373_s0 = inlined_call_operand.hbm [shape: f32[8,1024], index: 0, kind: input, shape index: {}]   ;;  %s374_s1 = inlined_call_operand.hbm [shape: f32[2,64], index: 1, kind: input, shape index: {}]   ;;  %s375_s2 = inlined_call_operand.hbm [shape: f32[1,64], index: 2, kind: input, shape index: {}]   ;;  %s376_s3 = inlined_call_operand.hbm [shape: f32[8,512], index: 3, kind: output, shape index: {}]  }
   0x1   :  { %9 = vsyncpa [#allocation6], 0 }
   0x2   :  { %10 = vsyncpa [#allocation4], 0  ;;  %s287_s12 = smov [#allocation5]   ;;  %s288_s14 = smov [#allocation2]  }
   0x3   :  { %s27_s13 = sshll.u32 %s287_s12, 4  ;;  %s17_s15 = sshll.u32 %s288_s14, 4  ;;  %s28_s13 = int_to_ptr.vmem [resolvable:$true] %s27_s13  ;;  %s18_s15 = int_to_ptr.vmem [resolvable:$true] %s17_s15 }
   0x4   :  { %s193_s18 = scalar_lea.hbm %s374_s1, 32 }
   0x5   :  { %p194_p0 = scmp.ne.s32.totalorder %s374_s1, %s193_s18  ;;  %p197_p1 = scmp.lt.u32.totalorder %s193_s18, %s374_s1 }
   0x7   :  { %p199_p2 = pnand %p197_p1, %p194_p0 }
   0x9   :  { %202 = shalt.err (!%p199_p2)
}
   0xa   :  { %s203_s23 = scalar_lea.vmem %s28_s13, 32  ;;  %p208_p4 = scmp.lt.s32.totalorder %s28_s13, %s28_s13 }
   0xb   :  { %p204_p3 = scmp.ne.s32.totalorder %s28_s13, %s203_s23  ;;  %p209_p5 = scmp.lt.s32.totalorder %s203_s23, %s203_s23 }
   0xd   :  { %p210_p6 = por %p209_p5, %p208_p4 }
   0xf   :  { %p211_p7 = pnand %p210_p6, %p204_p3 }
  0x11   :  { %214 = shalt.err (!%p211_p7)
}
  0x12   :  { %30 = dma.hbm_to_vmem [thread:$0]  %s374_s1, 32, %s28_s13, [#allocation6]  }
  0x13   :  { %s215_s28 = scalar_lea.hbm %s373_s0, 1024 }
  0x14   :  { %p216_p8 = scmp.ne.s32.totalorder %s373_s0, %s215_s28  ;;  %p219_p9 = scmp.lt.u32.totalorder %s215_s28, %s373_s0 }
  0x16   :  { %p221_p10 = pnand %p219_p9, %p216_p8 }
  0x18   :  { %224 = shalt.err (!%p221_p10)
}
  0x19   :  { %s225_s6 = scalar_lea.vmem %s18_s15, 1024  ;;  %p230_p12 = scmp.lt.s32.totalorder %s18_s15, %s18_s15 }
  0x1a   :  { %p226_p11 = scmp.ne.s32.totalorder %s18_s15, %s225_s6  ;;  %p231_p13 = scmp.lt.s32.totalorder %s225_s6, %s225_s6 }
  0x1c   :  { %p232_p0 = por %p231_p13, %p230_p12 }
  0x1e   :  { %p233_p1 = pnand %p232_p0, %p226_p11 }
  0x20   :  { %236 = shalt.err (!%p233_p1)
}
  0x21   :  { %20 = dma.hbm_to_vmem [thread:$0]  %s373_s0, 1024, %s18_s15, [#allocation3]  }
  0x22   :  { %s289_s8 = smov [#allocation7]   ;;  %s237_s12 = scalar_lea.hbm %s375_s2, 16 }
  0x23   :  { %s37_s9 = sshll.u32 %s289_s8, 4  ;;  %p238_p2 = scmp.ne.s32.totalorder %s375_s2, %s237_s12  ;;  %s38_s9 = int_to_ptr.vmem [resolvable:$true] %s37_s9 }
  0x24   :  { %p241_p3 = scmp.lt.u32.totalorder %s237_s12, %s375_s2 }
  0x26   :  { %p243_p4 = pnand %p241_p3, %p238_p2 }
  0x28   :  { %246 = shalt.err (!%p243_p4)
}
  0x29   :  { %s247_s18 = scalar_lea.vmem %s38_s9, 16  ;;  %s251_s0 = scalar_lea.vmem %s38_s9, 32 }
  0x2a   :  { %p248_p5 = scmp.ne.s32.totalorder %s38_s9, %s247_s18  ;;  %p252_p6 = scmp.lt.s32.totalorder %s38_s9, %s38_s9 }
  0x2b   :  { %p253_p7 = scmp.lt.s32.totalorder %s251_s0, %s247_s18 }
  0x2d   :  { %p254_p8 = por %p253_p7, %p252_p6 }
  0x2f   :  { %p255_p9 = pnand %p254_p8, %p248_p5 }
  0x31   :  { %258 = shalt.err (!%p255_p9)
}
  0x32   :  { %40 = dma.hbm_to_vmem [thread:$0]  %s375_s2, 16, %s38_s9, [#allocation6]  }
  0x33   :  { %281 = dma.done.wait [#allocation3], 1024  }
  0x34   :  { %282 = vsyncadd [#allocation3], 4294966272 }
  0x35   :  { %283 = dma.done.wait [#allocation6], 48  }
  0x36   :  { %284 = vsyncadd [#allocation6], 4294967248  ;;  %v187_v0 = vld [vmem:[#allocation5 + $0x1] ss:$0 sm:$0xff]  ;;  %s290_s20 = smov 64   ;;  %v107_v1 = vld [vmem:[#allocation2 + $0x18] sm:$0xff] }
  0x37   :  { %71 = vrot.lane.b32.xlu0 %v187_v0, %s290_s20  ;;  %v82_v2 = vld [vmem:[#allocation2 + $0x8] sm:$0xff]  ;;  %v155_v7 = vld [vmem:[#allocation2 + $0x38] sm:$0xff]  ;;  %v53_v10 = vld [vmem:[#allocation2] sm:$0xff]  ;;  %vm80_vm0 = vcmask 523264   ;;  %vm95_vm1 = vcmask 1048064   ;;  %s291_s2 = smov [#allocation8]  }
  0x38   :  { %v131_v6 = vld [vmem:[#allocation2 + $0x28] sm:$0xff]  ;;  %v97_v11 = vld [vmem:[#allocation2 + $0x10] sm:$0xff]  ;;  %v121_v14 = vld [vmem:[#allocation2 + $0x20] sm:$0xff]  ;;  %s175_s21 = sshll.u32 %s291_s2, 4  ;;  %s176_s21 = int_to_ptr.vmem [resolvable:$true] %s175_s21 }
  0x39   :  { %v145_v15 = vld [vmem:[#allocation2 + $0x30] sm:$0xff]  ;;  %v185_v18 = vld [vmem:[#allocation5] ss:$0 sm:$0xff]  ;;  %v186_v21 = vld [vmem:[#allocation7] ss:$0 sm:$0xff]  ;;  %s259_s22 = scalar_lea.vmem %s176_s21, 512  ;;  %p264_p11 = scmp.lt.s32.totalorder %s176_s21, %s176_s21 }
  0x3a   :  { %v108_v19 = vmul.f32 %v185_v18, %v107_v1  ;;  %v83_v20 = vmul.f32 %v185_v18, %v82_v2  ;;  %v132_v24 = vmul.f32 %v185_v18, %v131_v6  ;;  %v156_v25 = vmul.f32 %v185_v18, %v155_v7  ;;  %p260_p10 = scmp.ne.s32.totalorder %s176_s21, %s259_s22  ;;  %p265_p12 = scmp.lt.s32.totalorder %s259_s22, %s259_s22 }
  0x3b   :  { %v58_v28 = vmul.f32 %v185_v18, %v53_v10  ;;  %v98_v29 = vmul.f32 %v185_v18, %v97_v11  ;;  %v122_v40 = vmul.f32 %v185_v18, %v121_v14  ;;  %v146_v41 = vmul.f32 %v185_v18, %v145_v15 }
  0x3c   :  { %v109_v22 = vadd.f32 %v186_v21, %v108_v19  ;;  %v84_v23 = vadd.f32 %v186_v21, %v83_v20  ;;  %v133_v32 = vadd.f32 %v186_v21, %v132_v24  ;;  %v157_v33 = vadd.f32 %v186_v21, %v156_v25  ;;  %p266_p13 = por %p265_p12, %p264_p11 }
  0x3d   :  { %v65_v36 = vadd.f32 %v186_v21, %v58_v28  ;;  %v99_v37 = vadd.f32 %v186_v21, %v98_v29  ;;  %v123_v46 = vadd.f32 %v186_v21, %v122_v40  ;;  %v147_v47 = vadd.f32 %v186_v21, %v146_v41 }
  0x3e   :  { %p267_p0 = pnand %p266_p13, %p260_p10 }
  0xa9   :  { %v72_v3 = vpop.permute.xlu0 %71 }
  0xaa   :  { %v110_v4 = vmul.f32 %v107_v1, %v72_v3  ;;  %v85_v5 = vmul.f32 %v82_v2, %v72_v3  ;;  %v134_v8 = vmul.f32 %v131_v6, %v72_v3  ;;  %v158_v9 = vmul.f32 %v155_v7, %v72_v3 }
  0xab   :  { %v74_v12 = vmul.f32 %v72_v3, %v53_v10  ;;  %v100_v13 = vmul.f32 %v97_v11, %v72_v3  ;;  %v124_v16 = vmul.f32 %v121_v14, %v72_v3  ;;  %v148_v17 = vmul.f32 %v145_v15, %v72_v3 }
  0xac   :  { %112 = vrot.lane.b32.xlu1 %v110_v4, %s290_s20  ;;  %87 = vrot.lane.b32.xlu0 %v85_v5, %s290_s20 }
  0xb0   :  { %136 = vrot.lane.b32.xlu1 %v134_v8, %s290_s20  ;;  %160 = vrot.lane.b32.xlu0 %v158_v9, %s290_s20 }
  0xb4   :  { %76 = vrot.lane.b32.xlu1 %v74_v12, %s290_s20  ;;  %102 = vrot.lane.b32.xlu0 %v100_v13, %s290_s20 }
  0xb8   :  { %126 = vrot.lane.b32.xlu1 %v124_v16, %s290_s20  ;;  %150 = vrot.lane.b32.xlu0 %v148_v17, %s290_s20 }
 0x11e   :  { %v113_v26 = vpop.permute.xlu1 %112  ;;  %v88_v27 = vpop.permute.xlu0 %87 }
 0x11f   :  { %v115_v30 = vadd.f32 %v113_v26, %v109_v22  ;;  %v90_v31 = vadd.f32 %v88_v27, %v84_v23 }
 0x121   :  { %117 = vrot.lane.b32.xlu0 %v115_v30, %s290_s20  ;;  %92 = vrot.lane.b32.xlu1 %v90_v31, %s290_s20 }
 0x122   :  { %v137_v34 = vpop.permute.xlu1 %136  ;;  %v161_v35 = vpop.permute.xlu0 %160 }
 0x123   :  { %v139_v38 = vadd.f32 %v137_v34, %v133_v32  ;;  %v163_v39 = vadd.f32 %v161_v35, %v157_v33 }
 0x125   :  { %165 = vrot.lane.b32.xlu0 %v163_v39, %s290_s20  ;;  %141 = vrot.lane.b32.xlu1 %v139_v38, %s290_s20 }
 0x126   :  { %v77_v42 = vpop.permute.xlu1 %76  ;;  %v103_v43 = vpop.permute.xlu0 %102 }
 0x127   :  { %v79_v44 = vadd.f32 %v77_v42, %v65_v36  ;;  %v105_v45 = vadd.f32 %v103_v43, %v99_v37 }
 0x129   :  { %81 = vst.msk [vmem:[#allocation8] sm:$0xff] %vm80_vm0, %v79_v44  ;;  %106 = vst.msk [vmem:[#allocation8 + $0x8] sm:$0xff] %vm80_vm0, %v105_v45 }
 0x12a   :  { %v127_v48 = vpop.permute.xlu1 %126  ;;  %v151_v49 = vpop.permute.xlu0 %150 }
 0x12b   :  { %v129_v50 = vadd.f32 %v127_v48, %v123_v46  ;;  %v153_v51 = vadd.f32 %v151_v49, %v147_v47 }
 0x12d   :  { %130 = vst.msk [vmem:[#allocation8 + $0x10] sm:$0xff] %vm80_vm0, %v129_v50  ;;  %154 = vst.msk [vmem:[#allocation8 + $0x18] sm:$0xff] %vm80_vm0, %v153_v51 }
 0x193   :  { %v118_v52 = vpop.permute.xlu0 %117  ;;  %v93_v53 = vpop.permute.xlu1 %92 }
 0x194   :  { %120 = vst.msk [vmem:[#allocation8 + $0x8] sm:$0xff] %vm95_vm1, %v118_v52  ;;  %96 = vst.msk [vmem:[#allocation8] sm:$0xff] %vm95_vm1, %v93_v53 }
 0x197   :  { %v166_v54 = vpop.permute.xlu0 %165  ;;  %v142_v55 = vpop.permute.xlu1 %141 }
 0x198   :  { %168 = vst.msk [vmem:[#allocation8 + $0x18] sm:$0xff] %vm95_vm1, %v166_v54  ;;  %144 = vst.msk [vmem:[#allocation8 + $0x10] sm:$0xff] %vm95_vm1, %v142_v55 }
 0x199   :  { %270 = shalt.err (!%p267_p0)
}
 0x19a   :  { %s271_s25 = scalar_lea.hbm %s376_s3, 512 }
 0x19b   :  { %p272_p1 = scmp.ne.s32.totalorder %s376_s3, %s271_s25  ;;  %p275_p2 = scmp.lt.u32.totalorder %s271_s25, %s376_s3 }
 0x19d   :  { %p277_p3 = pnand %p275_p2, %p272_p1 }
 0x19f   :  { %280 = shalt.err (!%p277_p3)
}
 0x1a0   :  { %178 = dma.vmem_to_hbm [thread:$0]  %s176_s21, 512, %s376_s3, [#allocation4]  }
 0x1a1   :  { %285 = dma.done.wait [#allocation4], 512  }
 0x1a2   :  { %286 = vsyncadd [#allocation4], 4294966784 }
 0x1a3   :  { %182 = vsyncpa [#allocation3], 1 }
 0x1a4   :  { %183 = vsyncpa [#allocation6], 1 }
 0x1a5   :  { %184 = vsyncpa [#allocation4], 1 }

</bundles_post_ra>
